<compile_context>
chip_gen: v6e
topology: v6e:2x2x1
jax: 0.10.0
libtpu: 0.0.40
codegen_flags: <defaults>
</compile_context>

<pallas_src>
import jax
import jax.numpy as jnp
from jax.experimental import pallas as pl
from jax.experimental.pallas import tpu as pltpu

_EPS = 1e-5
_LANES = 128


def _round_up(n, m):
    return ((n + m - 1) // m) * m


def _res_tower_kernel(x_hbm_ref, w1_ref, w2_ref, bnv_ref, o_ref, dma_sem):
    """One grid step == one residual block; activation carried in o_ref (VMEM,
    constant output index map -> resident across the layer axis)."""
    l = pl.program_id(0)

    @pl.when(l == 0)
    def _():
        # Seed the resident activation from HBM exactly once.
        cp = pltpu.make_async_copy(x_hbm_ref, o_ref, dma_sem)
        cp.start()
        cp.wait()

    x = o_ref[...]                                      # (B, Cp) f32, VMEM-resident
    inv_b = jnp.float32(1.0 / x.shape[0])

    bnv = bnv_ref[...]                                  # (8, Cp) f32 packed vectors
    g1, be1 = bnv[0:1, :], bnv[1:2, :]
    g2, be2 = bnv[2:3, :], bnv[3:4, :]

    def bn_fold(h, g, b):
        # Training-mode BN, two-pass stats (avoids E[h^2]-mean^2 cancellation),
        # affine folded:  (h - m) * (g * rsqrt(var+eps)) + b
        m = jnp.sum(h, axis=0, keepdims=True) * inv_b
        d = h - m
        var = jnp.sum(d * d, axis=0, keepdims=True) * inv_b
        scale = g * jax.lax.rsqrt(var + _EPS)           # rsqrt -> EUP slot
        return d * scale + b

    # fc1 (bias dropped: cancelled by batch-stat BN) -> bn1 -> relu
    h = jnp.dot(x.astype(w1_ref.dtype), w1_ref[...],
                preferred_element_type=jnp.float32)
    h = jnp.maximum(bn_fold(h, g1, be1), 0.0)

    # fc2 (bias dropped) -> bn2
    h = jnp.dot(h.astype(w2_ref.dtype), w2_ref[...],
                preferred_element_type=jnp.float32)
    h = bn_fold(h, g2, be2)

    # residual add (re-read activation from VMEM: short live range) + relu
    o_ref[...] = jnp.maximum(o_ref[...] + h, 0.0)


def residual_tower(x, params):
    """Apply the stacked ResidualBlocks in `params` with a single fused pallas_call.

    x:      (B, C) array
    params: dict produced by init_params(); kernel-ready tensors:
            w1_p, w2_p : (L, Cp, Cp) pre-padded, pre-transposed (in, out), matmul dtype
            bn_p       : (L, 8, Cp) f32, rows [gamma1, beta1, gamma2, beta2, 0...]
    """
    w1, w2, bnv = params["w1_p"], params["w2_p"], params["bn_p"]
    L, Cp, _ = w1.shape
    B, C = x.shape
    pad = Cp - C

    x_p = x.astype(jnp.float32)
    if pad:
        x_p = jnp.pad(x_p, ((0, 0), (0, pad)))          # activation only: B*C, cheap

    # Scoped-VMEM budget: resident activation + f32 temporaries + double-buffered
    # weight blocks + packed BN block + headroom.  v5e default is ~16 MiB.
    w_bytes = jnp.dtype(w1.dtype).itemsize
    vmem_need = (3 * B * Cp * 4
                 + 2 * (2 * Cp * Cp * w_bytes)
                 + 2 * 8 * Cp * 4
                 + (1 << 20))
    vmem_limit = int(min(max(vmem_need, 32 << 20), 110 << 20))

    mat_spec = pl.BlockSpec((None, Cp, Cp), lambda l: (l, 0, 0))
    bn_spec = pl.BlockSpec((None, 8, Cp), lambda l: (l, 0, 0))
    out_spec = pl.BlockSpec((B, Cp), lambda l: (0, 0))   # constant -> VMEM-resident

    out = pl.pallas_call(
        _res_tower_kernel,
        out_shape=jax.ShapeDtypeStruct((B, Cp), jnp.float32),
        grid=(L,),
        in_specs=[pl.BlockSpec(memory_space=pl.ANY),     # x: raw HBM, manual DMA once
                  mat_spec, mat_spec, bn_spec],
        out_specs=out_spec,
        scratch_shapes=[pltpu.SemaphoreType.DMA],
        compiler_params=pltpu.CompilerParams(
            dimension_semantics=("arbitrary",),          # layer axis carries activation
            vmem_limit_bytes=vmem_limit),
    )(x_p, w1, w2, bnv)

    return out[:, :C] if pad else out


def residual_block(x, params):
    """Single PyTorch-module equivalent: a tower of length 1."""
    return residual_tower(x, params)


def init_params(key, channels, num_blocks=1, matmul_dtype=jnp.bfloat16):
    """PyTorch-default init (Linear: U(-1/sqrt(C), 1/sqrt(C)); BN: gamma=1, beta=0),
    stacked over `num_blocks` layers.

    Kernel-ready tensors are padded / packed / cast HERE (once), not per forward:
      w1_p, w2_p : (L, Cp, Cp) zero-padded, pre-transposed (in, out), matmul dtype
      bn_p       : (L, 8, Cp) f32, rows [gamma1, beta1, gamma2, beta2, 0, 0, 0, 0];
                   gamma zero-padded so padded channels stay exactly 0 every layer.
    Unpadded f32 tensors (and biases) are kept only for the pure-JAX reference;
    the kernel drops the FC biases (cancelled by batch-stat BN).
    """
    C, L = channels, num_blocks
    Cp = _round_up(C, _LANES)
    pad = Cp - C
    bound = float(C) ** -0.5

    w1, b1, w2, b2 = [], [], [], []
    for _ in range(L):
        key, k1, k2, k3, k4 = jax.random.split(key, 5)
        w1.append(jax.random.uniform(k1, (C, C), jnp.float32, -bound, bound).T)
        b1.append(jax.random.uniform(k2, (1, C), jnp.float32, -bound, bound))
        w2.append(jax.random.uniform(k3, (C, C), jnp.float32, -bound, bound).T)
        b2.append(jax.random.uniform(k4, (1, C), jnp.float32, -bound, bound))
    w1_t, w2_t = jnp.stack(w1), jnp.stack(w2)
    b1, b2 = jnp.stack(b1), jnp.stack(b2)
    gamma = jnp.ones((L, 1, C), jnp.float32)
    beta = jnp.zeros((L, 1, C), jnp.float32)

    def pad_mat(w):                      # (L, C, C) -> (L, Cp, Cp), zero padded
        return jnp.pad(w, ((0, 0), (0, pad), (0, pad))).astype(matmul_dtype)

    bn_p = jnp.zeros((L, 8, Cp), jnp.float32)
    bn_p = bn_p.at[:, 0, :C].set(gamma[:, 0, :])
    bn_p = bn_p.at[:, 1, :C].set(beta[:, 0, :])
    bn_p = bn_p.at[:, 2, :C].set(gamma[:, 0, :])
    bn_p = bn_p.at[:, 3, :C].set(beta[:, 0, :])

    return {
        # kernel-ready (padded / packed / cast once)
        "w1_p": pad_mat(w1_t), "w2_p": pad_mat(w2_t), "bn_p": bn_p,
        # reference-only (unpadded f32, with biases)
        "w1_t": w1_t, "b1": b1, "w2_t": w2_t, "b2": b2,
        "gamma1": gamma, "beta1": beta, "gamma2": gamma, "beta2": beta,
    }


def residual_tower_ref(x, params):
    """Pure-JAX reference of L stacked PyTorch ResidualBlocks
    (training-mode BN, f32 math, biases included)."""
    def bn(h, g, b):
        m = jnp.mean(h, axis=0, keepdims=True)
        v = jnp.mean((h - m) ** 2, axis=0, keepdims=True)
        return (h - m) / jnp.sqrt(v + _EPS) * g + b

    L = params["w1_t"].shape[0]
    y = x.astype(jnp.float32)
    for l in range(L):
        h = y @ params["w1_t"][l].astype(jnp.float32) + params["b1"][l]
        h = jax.nn.relu(bn(h, params["gamma1"][l], params["beta1"][l]))
        h = h @ params["w2_t"][l].astype(jnp.float32) + params["b2"][l]
        h = bn(h, params["gamma2"][l], params["beta2"][l])
        y = jax.nn.relu(y + h)
    return y


if __name__ == "__main__":
    key = jax.random.PRNGKey(0)
    kx, kp = jax.random.split(key)

    batch, channels = 8, 32
    x = jax.random.normal(kx, (batch, channels), jnp.float32)

    # 1) Exact-semantics check (f32 matmuls), single block == the PyTorch module.
    p1 = init_params(kp, channels, num_blocks=1, matmul_dtype=jnp.float32)
    out1 = jax.block_until_ready(residual_block(x, p1))
    ref1 = residual_tower_ref(x, p1)
    assert out1.shape == (batch, channels)
    assert jnp.allclose(out1, ref1, atol=1e-4, rtol=1e-4), "single-block f32 mismatch"

    # 2) Fused 3-block tower in one pallas_call, f32 matmuls.
    p3 = init_params(kp, channels, num_blocks=3, matmul_dtype=jnp.float32)
    out3 = jax.block_until_ready(residual_tower(x, p3))
    ref3 = residual_tower_ref(x, p3)
    assert jnp.allclose(out3, ref3, atol=1e-4, rtol=1e-4), "fused tower f32 mismatch"

    # 3) bf16-MXU fast path (recommended default on v5e/v6e/v7x); BN/residual stay
    #    f32.  Reference uses the same (bf16-quantized) weights so the comparison
    #    isolates matmul rounding.
    pb = init_params(kp, channels, num_blocks=1, matmul_dtype=jnp.bfloat16)
    pb_ref = dict(pb)
    pb_ref["w1_t"] = pb["w1_p"][:, :channels, :channels].astype(jnp.float32)
    pb_ref["w2_t"] = pb["w2_p"][:, :channels, :channels].astype(jnp.float32)
    outb = jax.block_until_ready(residual_block(x, pb))
    refb = residual_tower_ref(x, pb_ref)
    assert jnp.allclose(outb, refb, atol=8e-2, rtol=8e-2), "bf16 path mismatch"

    print("KERNEL_OK")
</pallas_src>

<mosaic_0001>
module attributes {stable_mosaic.version = 11 : i64} {
  func.func @_res_tower_kernel(%arg0: i32, %arg1: memref<8x128xf32, #tpu.memory_space<any>>, %arg2: memref<1x128x128xf32, #tpu.memory_space<vmem>>, %arg3: memref<1x128x128xf32, #tpu.memory_space<vmem>>, %arg4: memref<1x8x128xf32, #tpu.memory_space<vmem>>, %arg5: memref<8x128xf32, #tpu.memory_space<vmem>>, %arg6: memref<!tpu.dma_semaphore, #tpu.memory_space<semaphore_mem>>) attributes {dimension_semantics = [#tpu.dimension_semantics<arbitrary>], iteration_bounds = array<i64: 1>, scalar_prefetch = 0 : i64, scratch_operands = 1 : i64, tpu.core_type = #tpu.core_type<tc>, window_params = [{}, {transform_indices = @transform_1, window_bounds = array<i64: 1, 128, 128>}, {transform_indices = @transform_2, window_bounds = array<i64: 1, 128, 128>}, {transform_indices = @transform_3, window_bounds = array<i64: 1, 8, 128>}, {pipeline_mode = #tpu.pipeline_mode<synchronous>, transform_indices = @transform_4, window_bounds = array<i64: 8, 128>}]} {
    %c0_i32 = arith.constant 0 : i32
    %0 = arith.cmpi eq, %arg0, %c0_i32 : i32
    %1 = arith.extui %0 : i1 to i32
    %c0_i32_0 = arith.constant 0 : i32
    %2 = arith.cmpi ne, %1, %c0_i32_0 : i32
    scf.if %2 {
      tpu.enqueue_dma source(%arg1 : memref<8x128xf32, #tpu.memory_space<any>>) target(%arg5 : memref<8x128xf32, #tpu.memory_space<vmem>>) target_semaphore(%arg6 : memref<!tpu.dma_semaphore, #tpu.memory_space<semaphore_mem>>)
      tpu.wait_dma2 semaphore(%arg6 : memref<!tpu.dma_semaphore, #tpu.memory_space<semaphore_mem>>) src(%arg1 : memref<8x128xf32, #tpu.memory_space<any>>) dst(%arg5 : memref<8x128xf32, #tpu.memory_space<vmem>>)
    } else {
    }
    %c0 = arith.constant 0 : index
    %c0_1 = arith.constant 0 : index
    %3 = vector.load %arg5[%c0, %c0_1] : memref<8x128xf32, #tpu.memory_space<vmem>>, vector<8x128xf32>
    %c0_2 = arith.constant 0 : index
    %c0_3 = arith.constant 0 : index
    %c0_4 = arith.constant 0 : index
    %4 = vector.load %arg4[%c0_2, %c0_3, %c0_4] : memref<1x8x128xf32, #tpu.memory_space<vmem>>, vector<1x8x128xf32>
    %5 = vector.shape_cast %4 : vector<1x8x128xf32> to vector<8x128xf32>
    %6 = vector.extract_strided_slice %5 {offsets = [0, 0], sizes = [1, 128], strides = [1, 1]} : vector<8x128xf32> to vector<1x128xf32>
    %7 = vector.extract_strided_slice %5 {offsets = [1, 0], sizes = [1, 128], strides = [1, 1]} : vector<8x128xf32> to vector<1x128xf32>
    %8 = vector.extract_strided_slice %5 {offsets = [2, 0], sizes = [1, 128], strides = [1, 1]} : vector<8x128xf32> to vector<1x128xf32>
    %9 = vector.extract_strided_slice %5 {offsets = [3, 0], sizes = [1, 128], strides = [1, 1]} : vector<8x128xf32> to vector<1x128xf32>
    %c0_5 = arith.constant 0 : index
    %c0_6 = arith.constant 0 : index
    %c0_7 = arith.constant 0 : index
    %10 = vector.load %arg2[%c0_5, %c0_6, %c0_7] : memref<1x128x128xf32, #tpu.memory_space<vmem>>, vector<1x128x128xf32>
    %11 = vector.shape_cast %10 : vector<1x128x128xf32> to vector<128x128xf32>
    %cst = arith.constant dense<0.000000e+00> : vector<8x128xf32>
    %12 = tpu.matmul %3, %11, %cst {dimension_numbers = #tpu.dot_dimension_numbers<[1], [0], [0], [1], [0, 0, 1, 1], [], []>} : vector<8x128xf32>, vector<128x128xf32>, vector<8x128xf32> -> vector<8x128xf32>
    %cst_8 = arith.constant dense<0.000000e+00> : vector<128xf32>
    %13 = vector.multi_reduction <add>, %12, %cst_8 [0] : vector<8x128xf32> to vector<128xf32>
    %14 = vector.shape_cast %13 : vector<128xf32> to vector<1x128xf32>
    %cst_9 = arith.constant 1.250000e-01 : f32
    %15 = vector.broadcast %cst_9 : f32 to vector<1x128xf32>
    %16 = arith.mulf %14, %15 : vector<1x128xf32>
    %17 = vector.broadcast %16 : vector<1x128xf32> to vector<8x128xf32>
    %18 = arith.subf %12, %17 : vector<8x128xf32>
    %19 = arith.mulf %18, %18 : vector<8x128xf32>
    %cst_10 = arith.constant dense<0.000000e+00> : vector<128xf32>
    %20 = vector.multi_reduction <add>, %19, %cst_10 [0] : vector<8x128xf32> to vector<128xf32>
    %21 = vector.shape_cast %20 : vector<128xf32> to vector<1x128xf32>
    %cst_11 = arith.constant 1.250000e-01 : f32
    %22 = vector.broadcast %cst_11 : f32 to vector<1x128xf32>
    %23 = arith.mulf %21, %22 : vector<1x128xf32>
    %cst_12 = arith.constant 9.99999974E-6 : f32
    %24 = vector.broadcast %cst_12 : f32 to vector<1x128xf32>
    %25 = arith.addf %23, %24 : vector<1x128xf32>
    %26 = math.rsqrt %25 : vector<1x128xf32>
    %27 = arith.mulf %6, %26 : vector<1x128xf32>
    %28 = vector.broadcast %27 : vector<1x128xf32> to vector<8x128xf32>
    %29 = arith.mulf %18, %28 : vector<8x128xf32>
    %30 = vector.broadcast %7 : vector<1x128xf32> to vector<8x128xf32>
    %31 = arith.addf %29, %30 : vector<8x128xf32>
    %cst_13 = arith.constant 0.000000e+00 : f32
    %32 = vector.broadcast %cst_13 : f32 to vector<8x128xf32>
    %33 = arith.maximumf %31, %32 : vector<8x128xf32>
    %c0_14 = arith.constant 0 : index
    %c0_15 = arith.constant 0 : index
    %c0_16 = arith.constant 0 : index
    %34 = vector.load %arg3[%c0_14, %c0_15, %c0_16] : memref<1x128x128xf32, #tpu.memory_space<vmem>>, vector<1x128x128xf32>
    %35 = vector.shape_cast %34 : vector<1x128x128xf32> to vector<128x128xf32>
    %cst_17 = arith.constant dense<0.000000e+00> : vector<8x128xf32>
    %36 = tpu.matmul %33, %35, %cst_17 {dimension_numbers = #tpu.dot_dimension_numbers<[1], [0], [0], [1], [0, 0, 1, 1], [], []>} : vector<8x128xf32>, vector<128x128xf32>, vector<8x128xf32> -> vector<8x128xf32>
    %cst_18 = arith.constant dense<0.000000e+00> : vector<128xf32>
    %37 = vector.multi_reduction <add>, %36, %cst_18 [0] : vector<8x128xf32> to vector<128xf32>
    %38 = vector.shape_cast %37 : vector<128xf32> to vector<1x128xf32>
    %cst_19 = arith.constant 1.250000e-01 : f32
    %39 = vector.broadcast %cst_19 : f32 to vector<1x128xf32>
    %40 = arith.mulf %38, %39 : vector<1x128xf32>
    %41 = vector.broadcast %40 : vector<1x128xf32> to vector<8x128xf32>
    %42 = arith.subf %36, %41 : vector<8x128xf32>
    %43 = arith.mulf %42, %42 : vector<8x128xf32>
    %cst_20 = arith.constant dense<0.000000e+00> : vector<128xf32>
    %44 = vector.multi_reduction <add>, %43, %cst_20 [0] : vector<8x128xf32> to vector<128xf32>
    %45 = vector.shape_cast %44 : vector<128xf32> to vector<1x128xf32>
    %cst_21 = arith.constant 1.250000e-01 : f32
    %46 = vector.broadcast %cst_21 : f32 to vector<1x128xf32>
    %47 = arith.mulf %45, %46 : vector<1x128xf32>
    %cst_22 = arith.constant 9.99999974E-6 : f32
    %48 = vector.broadcast %cst_22 : f32 to vector<1x128xf32>
    %49 = arith.addf %47, %48 : vector<1x128xf32>
    %50 = math.rsqrt %49 : vector<1x128xf32>
    %51 = arith.mulf %8, %50 : vector<1x128xf32>
    %52 = vector.broadcast %51 : vector<1x128xf32> to vector<8x128xf32>
    %53 = arith.mulf %42, %52 : vector<8x128xf32>
    %54 = vector.broadcast %9 : vector<1x128xf32> to vector<8x128xf32>
    %55 = arith.addf %53, %54 : vector<8x128xf32>
    %c0_23 = arith.constant 0 : index
    %c0_24 = arith.constant 0 : index
    %56 = vector.load %arg5[%c0_23, %c0_24] : memref<8x128xf32, #tpu.memory_space<vmem>>, vector<8x128xf32>
    %57 = arith.addf %56, %55 : vector<8x128xf32>
    %cst_25 = arith.constant 0.000000e+00 : f32
    %58 = vector.broadcast %cst_25 : f32 to vector<8x128xf32>
    %59 = arith.maximumf %57, %58 : vector<8x128xf32>
    %c0_26 = arith.constant 0 : index
    %c0_27 = arith.constant 0 : index
    %60 = vector.load %arg5[%c0_26, %c0_27] : memref<8x128xf32, #tpu.memory_space<vmem>>, vector<8x128xf32>
    tpu.vector_store %arg5[%c0_26, %c0_27], %59 {strides = array<i32>} : memref<8x128xf32, #tpu.memory_space<vmem>>, vector<8x128xf32>,
    return
  }
  func.func @transform_1(%arg0: i32) -> (i32, i32, i32) {
    %c0_i32 = arith.constant 0 : i32
    %c0_i32_0 = arith.constant 0 : i32
    %c0_i32_1 = arith.constant 0 : i32
    return %arg0, %c0_i32, %c0_i32_0 : i32, i32, i32
  }
  func.func @transform_2(%arg0: i32) -> (i32, i32, i32) {
    %c0_i32 = arith.constant 0 : i32
    %c0_i32_0 = arith.constant 0 : i32
    %c0_i32_1 = arith.constant 0 : i32
    return %arg0, %c0_i32, %c0_i32_0 : i32, i32, i32
  }
  func.func @transform_3(%arg0: i32) -> (i32, i32, i32) {
    %c0_i32 = arith.constant 0 : i32
    %c0_i32_0 = arith.constant 0 : i32
    %c0_i32_1 = arith.constant 0 : i32
    return %arg0, %c0_i32, %c0_i32_0 : i32, i32, i32
  }
  func.func @transform_4(%arg0: i32) -> (i32, i32) {
    %c0_i32 = arith.constant 0 : i32
    %c0_i32_0 = arith.constant 0 : i32
    %c0_i32_1 = arith.constant 0 : i32
    return %c0_i32, %c0_i32_0 : i32, i32
  }
}

</mosaic_0001>

<bundles_post_ra>
// kernel: tpu_custom_call.1
= control target key start
LH: loop header
LB: loop body
LE: loop exit
PB: predicated region body
PF: predicated region fallthrough
CT: control target
= control target key end

     0   :  { %9 = vsyncpa [#allocation4], 0  ;;  %s658_s0 = inlined_call_operand.hbm [shape: f32[8,128], index: 0, kind: input, shape index: {}]   ;;  %s659_s1 = inlined_call_operand.hbm [shape: f32[1,128,128], index: 1, kind: input, shape index: {}]   ;;  %s660_s2 = inlined_call_operand.hbm [shape: f32[1,128,128], index: 2, kind: input, shape index: {}]   ;;  %s661_s3 = inlined_call_operand.hbm [shape: f32[1,8,128], index: 3, kind: input, shape index: {}]   ;;  %s662_s4 = inlined_call_operand.hbm [shape: f32[8,128], index: 4, kind: output, shape index: {}]  }
   0x1   :  { %10 = vsyncpa [#allocation7], 0 }
   0x2   :  { %11 = vsyncpa [#allocation5], 0  ;;  %s556_s15 = smov [#allocation6]   ;;  %s557_s17 = smov [#allocation3]  }
   0x3   :  { %s29_s16 = sshll.u32 %s556_s15, 4  ;;  %s17_s18 = sshll.u32 %s557_s17, 4  ;;  %s30_s16 = int_to_ptr.vmem [resolvable:$true] %s29_s16  ;;  %s18_s18 = int_to_ptr.vmem [resolvable:$true] %s17_s18 }
   0x4   :  { %s456_s19 = scalar_lea.vmem %s30_s16, 2048  ;;  %p461_p1 = scmp.lt.s32.totalorder %s30_s16, %s30_s16 }
   0x5   :  { %p457_p0 = scmp.ne.s32.totalorder %s30_s16, %s456_s19  ;;  %p462_p2 = scmp.lt.s32.totalorder %s456_s19, %s456_s19 }
   0x7   :  { %p463_p3 = por %p462_p2, %p461_p1 }
   0x9   :  { %p464_p4 = pnand %p463_p3, %p457_p0 }
   0xb   :  { %467 = shalt.err (!%p464_p4)
}
   0xc   :  { %s558_s20 = smov 128   ;;  %s559_s21 = smov 8  }
   0xd   :  { %35 = dma.hbm_to_vmem [thread:$0]  %s660_s2, 2048, %s30_s16, [#allocation7], %s558_s20, %s558_s20, %s559_s21  }
   0xe   :  { %s476_s24 = scalar_lea.vmem %s18_s18, 2048  ;;  %p481_p6 = scmp.lt.s32.totalorder %s18_s18, %s18_s18 }
   0xf   :  { %p477_p5 = scmp.ne.s32.totalorder %s18_s18, %s476_s24  ;;  %p482_p7 = scmp.lt.s32.totalorder %s476_s24, %s476_s24 }
  0x11   :  { %p483_p8 = por %p482_p7, %p481_p6 }
  0x13   :  { %p484_p9 = pnand %p483_p8, %p477_p5 }
  0x15   :  { %487 = shalt.err (!%p484_p9)
}
  0x16   :  { %23 = dma.hbm_to_vmem [thread:$0]  %s659_s1, 2048, %s18_s18, [#allocation4], %s558_s20, %s558_s20, %s559_s21  }
  0x17   :  { %s560_s27 = smov [#allocation8]  }
  0x18   :  { %s42_s28 = sshll.u32 %s560_s27, 4  ;;  %s43_s28 = int_to_ptr.vmem [resolvable:$true] %s42_s28 }
  0x19   :  { %s496_s29 = scalar_lea.vmem %s43_s28, 128  ;;  %p501_p11 = scmp.lt.s32.totalorder %s43_s28, %s43_s28 }
  0x1a   :  { %p497_p10 = scmp.ne.s32.totalorder %s43_s28, %s496_s29  ;;  %p502_p12 = scmp.lt.s32.totalorder %s496_s29, %s496_s29 }
  0x1c   :  { %p503_p13 = por %p502_p12, %p501_p11 }
  0x1e   :  { %p504_p0 = pnand %p503_p13, %p497_p10 }
  0x20   :  { %507 = shalt.err (!%p504_p0)
}
  0x21   :  { %45 = dma.hbm_to_vmem [thread:$0]  %s661_s3, 128, %s43_s28, [#allocation7]  }
  0x22   :  { %548 = dma.done.wait [#allocation4], 2048  }
  0x23   :  { %549 = vsyncadd [#allocation4], 4294965248 }
  0x24   :  { %550 = dma.done.wait [#allocation7], 2176  }
  0x25   :  { %551 = vsyncadd [#allocation7], 4294965120  ;;  %s561_s5 = smov [#allocation9]  }
  0x26   :  { %s66_s1 = sshll.u32 %s561_s5, 4  ;;  %s598_s1 = int_to_ptr.vmem [resolvable:$true] %s66_s1 }
  0x27   :  { %s516_s6 = scalar_lea.vmem %s598_s1, 128  ;;  %p521_p2 = scmp.lt.s32.totalorder %s598_s1, %s598_s1 }
  0x28   :  { %p517_p1 = scmp.ne.s32.totalorder %s598_s1, %s516_s6  ;;  %p522_p3 = scmp.lt.s32.totalorder %s516_s6, %s516_s6 }
  0x2a   :  { %p523_p4 = por %p522_p3, %p521_p2 }
  0x2c   :  { %p604_p5 = pnand %p523_p4, %p517_p1 }
  0x2e   :  { %527 = shalt.err (!%p604_p5)  }
  0x2f   :  { %69 = dma.hbm_to_vmem [thread:$0]  %s658_s0, 128, %s598_s1, [#allocation2] }
  0x30   :  { %552 = dma.done.wait [#allocation2], 128 }
  0x31   :  { %553 = vsyncadd [#allocation2], 4294967168  ;;  %v562_v0 = vmov 0.0   ;;  %vm563_vm0 = vmmov 0   ;;  %v90_v1 = vld [vmem:[#allocation3 + $0x78] sm:$0xff]  ;;  %v89_v2 = vld [vmem:[#allocation3 + $0x70] sm:$0xff]  ;;  %v180_v53 = vlaneseq }
  0x32   :  { %366 = vmatprep.subr.mxu0 %v562_v0  ;;  %398 = vmatprep.mubr.msk.f32.mxu0 %vm563_vm0, %v562_v0  ;;  %v88_v3 = vld [vmem:[#allocation3 + $0x68] sm:$0xff]  ;;  %v87_v4 = vld [vmem:[#allocation3 + $0x60] sm:$0xff]  ;;  %v86_v5 = vld [vmem:[#allocation3 + $0x58] sm:$0xff] }
  0x33   :  { %401 = vmatprep.subr.mxu1 %v562_v0  ;;  %433 = vmatprep.mubr.msk.f32.mxu1 %vm563_vm0, %v562_v0  ;;  %v85_v6 = vld [vmem:[#allocation3 + $0x50] sm:$0xff]  ;;  %v84_v7 = vld [vmem:[#allocation3 + $0x48] sm:$0xff]  ;;  %v83_v8 = vld [vmem:[#allocation3 + $0x40] sm:$0xff]  ;;  %v181_v54 = vshrl.u32 %v180_v53, 7 }
  0x34   :  { %367 = vmatpush3.msra.mxu0 %v90_v1  ;;  %v82_v9 = vld [vmem:[#allocation3 + $0x38] sm:$0xff]  ;;  %v81_v10 = vld [vmem:[#allocation3 + $0x30] sm:$0xff]  ;;  %v80_v11 = vld [vmem:[#allocation3 + $0x28] sm:$0xff] }
  0x35   :  { %368 = vmatprep.subr.mxu0 %v562_v0  ;;  %v79_v12 = vld [vmem:[#allocation3 + $0x20] sm:$0xff]  ;;  %v78_v13 = vld [vmem:[#allocation3 + $0x18] sm:$0xff]  ;;  %v77_v14 = vld [vmem:[#allocation3 + $0x10] sm:$0xff]  ;;  %v182_v56 = vsub.s32 0, %v181_v54  ;;  %v187_v57 = vsub.s32 1, %v181_v54 }
  0x36   :  { %369 = vmatpush3.msra.mxu0 %v89_v2  ;;  %v76_v15 = vld [vmem:[#allocation3 + $0x8] sm:$0xff]  ;;  %v75_v16 = vld [vmem:[#allocation3] sm:$0xff]  ;;  %v206_v18 = vld [vmem:[#allocation6 + $0x78] sm:$0xff] }
  0x37   :  { %370 = vmatprep.subr.mxu0 %v562_v0  ;;  %v632_v17 = vld [vmem:[#allocation9] sm:$0xff]  ;;  %402 = vmatpush3.msra.mxu1 %v206_v18  ;;  %v205_v19 = vld [vmem:[#allocation6 + $0x70] sm:$0xff]  ;;  %v203_v21 = vld [vmem:[#allocation6 + $0x60] sm:$0xff] }
  0x38   :  { %371 = vmatpush3.msra.mxu0 %v88_v3  ;;  %403 = vmatprep.subr.mxu1 %v562_v0  ;;  %v204_v20 = vld [vmem:[#allocation6 + $0x68] sm:$0xff]  ;;  %v202_v22 = vld [vmem:[#allocation6 + $0x58] sm:$0xff]  ;;  %v201_v23 = vld [vmem:[#allocation6 + $0x50] sm:$0xff] }
  0x39   :  { %372 = vmatprep.subr.mxu0 %v562_v0  ;;  %404 = vmatpush3.msra.mxu1 %v205_v19  ;;  %v200_v24 = vld [vmem:[#allocation6 + $0x48] sm:$0xff]  ;;  %v199_v25 = vld [vmem:[#allocation6 + $0x40] sm:$0xff]  ;;  %v198_v26 = vld [vmem:[#allocation6 + $0x38] sm:$0xff] }
  0x3a   :  { %373 = vmatpush3.msra.mxu0 %v87_v4  ;;  %405 = vmatprep.subr.mxu1 %v562_v0  ;;  %v197_v27 = vld [vmem:[#allocation6 + $0x30] sm:$0xff]  ;;  %v196_v28 = vld [vmem:[#allocation6 + $0x28] sm:$0xff]  ;;  %v195_v29 = vld [vmem:[#allocation6 + $0x20] sm:$0xff] }
  0x3b   :  { %374 = vmatprep.subr.mxu0 %v562_v0  ;;  %406 = vmatpush3.msra.mxu1 %v204_v20  ;;  %v194_v30 = vld [vmem:[#allocation6 + $0x18] sm:$0xff]  ;;  %v193_v31 = vld [vmem:[#allocation6 + $0x10] sm:$0xff]  ;;  %v192_v32 = vld [vmem:[#allocation6 + $0x8] sm:$0xff] }
  0x3c   :  { %375 = vmatpush3.msra.mxu0 %v86_v5  ;;  %407 = vmatprep.subr.mxu1 %v562_v0  ;;  %v191_v33 = vld [vmem:[#allocation6] sm:$0xff] }
  0x3d   :  { %376 = vmatprep.subr.mxu0 %v562_v0  ;;  %408 = vmatpush3.msra.mxu1 %v203_v21  ;;  %v74_v55 = vld [vmem:[#allocation8] sm:$0xff]  ;;  %v298_v21 = vsub.s32 2, %v181_v54 }
  0x3e   :  { %377 = vmatpush3.msra.mxu0 %v85_v6  ;;  %409 = vmatprep.subr.mxu1 %v562_v0  ;;  %v188_v61 = vrot.slane %v74_v55, %v187_v57 }
  0x3f   :  { %378 = vmatprep.subr.mxu0 %v562_v0  ;;  %410 = vmatpush3.msra.mxu1 %v202_v22  ;;  %v303_v22 = vsub.s32 3, %v181_v54 }
  0x40   :  { %379 = vmatpush3.msra.mxu0 %v84_v7  ;;  %411 = vmatprep.subr.mxu1 %v562_v0 }
  0x41   :  { %380 = vmatprep.subr.mxu0 %v562_v0  ;;  %412 = vmatpush3.msra.mxu1 %v201_v23 }
  0x42   :  { %381 = vmatpush3.msra.mxu0 %v83_v8  ;;  %413 = vmatprep.subr.mxu1 %v562_v0 }
  0x43   :  { %382 = vmatprep.subr.mxu0 %v562_v0  ;;  %414 = vmatpush3.msra.mxu1 %v200_v24 }
  0x44   :  { %383 = vmatpush3.msra.mxu0 %v82_v9  ;;  %415 = vmatprep.subr.mxu1 %v562_v0 }
  0x45   :  { %384 = vmatprep.subr.mxu0 %v562_v0  ;;  %416 = vmatpush3.msra.mxu1 %v199_v25 }
  0x46   :  { %385 = vmatpush3.msra.mxu0 %v81_v10  ;;  %417 = vmatprep.subr.mxu1 %v562_v0 }
  0x47   :  { %386 = vmatprep.subr.mxu0 %v562_v0  ;;  %418 = vmatpush3.msra.mxu1 %v198_v26  ;;  %v304_v26 = vrot.slane %v74_v55, %v303_v22 }
  0x48   :  { %387 = vmatpush3.msra.mxu0 %v80_v11  ;;  %419 = vmatprep.subr.mxu1 %v562_v0 }
  0x49   :  { %388 = vmatprep.subr.mxu0 %v562_v0  ;;  %420 = vmatpush3.msra.mxu1 %v197_v27 }
  0x4a   :  { %389 = vmatpush3.msra.mxu0 %v79_v12  ;;  %421 = vmatprep.subr.mxu1 %v562_v0 }
  0x4b   :  { %390 = vmatprep.subr.mxu0 %v562_v0  ;;  %422 = vmatpush3.msra.mxu1 %v196_v28 }
  0x4c   :  { %391 = vmatpush3.msra.mxu0 %v78_v13  ;;  %423 = vmatprep.subr.mxu1 %v562_v0 }
  0x4d   :  { %392 = vmatprep.subr.mxu0 %v562_v0  ;;  %424 = vmatpush3.msra.mxu1 %v195_v29 }
  0x4e   :  { %393 = vmatpush3.msra.mxu0 %v77_v14  ;;  %425 = vmatprep.subr.mxu1 %v562_v0 }
  0x4f   :  { %394 = vmatprep.subr.mxu0 %v562_v0  ;;  %426 = vmatpush3.msra.mxu1 %v194_v30 }
  0x50   :  { %395 = vmatpush3.msra.mxu0 %v76_v15  ;;  %427 = vmatprep.subr.mxu1 %v562_v0 }
  0x51   :  { %396 = vmatprep.subr.mxu0 %v562_v0  ;;  %428 = vmatpush3.msra.mxu1 %v193_v31 }
  0x52   :  { %397 = vmatpush3.msra.mxu0 %v75_v16  ;;  %429 = vmatprep.subr.mxu1 %v562_v0 }
  0x53   :  { %399 = vmatmul.mubr.f32.vlgmr.msra.gmra.mxu0 %v632_v17  ;;  %430 = vmatpush3.msra.mxu1 %v192_v32 }
  0x54   :  { %431 = vmatprep.subr.mxu1 %v562_v0 }
  0x55   :  { %432 = vmatpush3.msra.mxu1 %v191_v33 }
 0x113   :  { %v157_v34 = vpop.f32.mrf.mxu0 }
 0x114   :  { %v161_v35 = vrot.slane %v157_v34, 4 }
 0x115   :  { %v400_v36 = vpop.f32.mrf.mxu0 }
 0x116   :  { %v162_v37 = vadd.f32 %v161_v35, %v157_v34 }
 0x118   :  { %v163_v38 = vrot.slane %v162_v37, 2 }
 0x11a   :  { %v164_v39 = vadd.f32 %v163_v38, %v162_v37 }
 0x11c   :  { %v165_v40 = vrot.slane %v164_v39, 1 }
 0x11e   :  { %v166_v41 = vadd.f32 %v165_v40, %v164_v39 }
 0x120   :  { %v167_v42 = vmul.f32 0.125, %v166_v41 }
 0x122   :  { %v168_v43 = vsub.f32 %v157_v34, %v167_v42 }
 0x124   :  { %v169_v44 = vmul.f32 %v168_v43, %v168_v43 }
 0x126   :  { %v170_v45 = vrot.slane %v169_v44, 4 }
 0x128   :  { %v171_v46 = vadd.f32 %v170_v45, %v169_v44 }
 0x12a   :  { %v172_v47 = vrot.slane %v171_v46, 2 }
 0x12c   :  { %v173_v48 = vadd.f32 %v172_v47, %v171_v46 }
 0x12e   :  { %v174_v49 = vrot.slane %v173_v48, 1 }
 0x130   :  { %v175_v50 = vadd.f32 %v174_v49, %v173_v48 }
 0x132   :  { %v176_v51 = vmul.f32 0.125, %v175_v50 }
 0x134   :  { %v177_v52 = vadd.f32 1e-05, %v176_v51 }
 0x136   :  { %444 = vrsqrt.f32 %v177_v52 }
 0x143   :  { %v445_v58 = vpop.eup %444 }
 0x144   :  { %v179_v59 = vmul.f32 %v445_v58, %v74_v55 }
 0x146   :  { %v183_v60 = vrot.slane %v179_v59, %v182_v56 }
 0x148   :  { %v184_v62 = vmul.f32 %v183_v60, %v168_v43 }
 0x14a   :  { %v189_v63 = vadd.f32 %v188_v61, %v184_v62 }
 0x14c   :  { %v190_v0 = vmax.f32 %v189_v63, 0.0 }
 0x14e   :  { %434 = vmatmul.mubr.f32.vlgmr.msra.gmra.mxu1 %v190_v0 }
 0x20e   :  { %v273_v1 = vpop.f32.mrf.mxu1 }
 0x20f   :  { %v277_v2 = vrot.slane %v273_v1, 4 }
 0x210   :  { %v435_v3 = vpop.f32.mrf.mxu1 }
 0x211   :  { %v278_v4 = vadd.f32 %v277_v2, %v273_v1 }
 0x213   :  { %v279_v5 = vrot.slane %v278_v4, 2 }
 0x215   :  { %v280_v6 = vadd.f32 %v279_v5, %v278_v4 }
 0x217   :  { %v281_v7 = vrot.slane %v280_v6, 1 }
 0x219   :  { %v282_v8 = vadd.f32 %v281_v7, %v280_v6 }
 0x21b   :  { %v283_v9 = vmul.f32 0.125, %v282_v8 }
 0x21d   :  { %v284_v10 = vsub.f32 %v273_v1, %v283_v9 }
 0x21f   :  { %v285_v11 = vmul.f32 %v284_v10, %v284_v10 }
 0x221   :  { %v286_v12 = vrot.slane %v285_v11, 4 }
 0x223   :  { %v287_v13 = vadd.f32 %v286_v12, %v285_v11 }
 0x225   :  { %v288_v14 = vrot.slane %v287_v13, 2 }
 0x227   :  { %v289_v15 = vadd.f32 %v288_v14, %v287_v13 }
 0x229   :  { %v290_v16 = vrot.slane %v289_v15, 1 }
 0x22b   :  { %v291_v18 = vadd.f32 %v290_v16, %v289_v15 }
 0x22d   :  { %v292_v19 = vmul.f32 0.125, %v291_v18 }
 0x22f   :  { %v293_v20 = vadd.f32 1e-05, %v292_v19 }
 0x231   :  { %446 = vrsqrt.f32 %v293_v20 }
 0x23e   :  { %v447_v23 = vpop.eup %446 }
 0x23f   :  { %v295_v24 = vmul.f32 %v447_v23, %v74_v55 }
 0x241   :  { %v299_v25 = vrot.slane %v295_v24, %v298_v21 }
 0x243   :  { %v300_v27 = vmul.f32 %v299_v25, %v284_v10 }
 0x245   :  { %v305_v28 = vadd.f32 %v304_v26, %v300_v27 }
 0x247   :  { %v306_v29 = vadd.f32 %v305_v28, %v632_v17 }
 0x249   :  { %v307_v30 = vmax.f32 %v306_v29, 0.0 }
 0x24b   :  { %308 = vst [vmem:[#allocation9] sm:$0xff] %v307_v30 }
 0x24c   :  { %539 = shalt.err (!%p604_p5)
}
 0x24d   :  { %318 = dma.vmem_to_hbm [thread:$0]  %s598_s1, 128, %s662_s4, [#allocation5]  }
 0x24e   :  { %554 = dma.done.wait [#allocation5], 128  }
 0x24f   :  { %555 = vsyncadd [#allocation5], 4294967168 }
 0x250   :  { %322 = vsyncpa [#allocation4], 1 }
 0x251   :  { %323 = vsyncpa [#allocation7], 1 }
 0x252   :  { %324 = vsyncpa [#allocation5], 1 }
 0x253   :  { %325 = vsyncmov [#allocation2] }
 0x256   :  { %s326_s10 = vpop.sfrf %325 }
 0x257   :  { %p331_p6 = scmp.ne.s32.totalorder %s326_s10, 0 }
 0x259   :  { %330 = shalt.err (%p331_p6)  }

</bundles_post_ra>
